<compile_context>
chip_gen: v7x
topology: tpu7x:2x2x1
jax: 0.10.0
libtpu: 0.0.40
codegen_flags: <defaults>
</compile_context>

<pallas_src>
import jax
import jax.numpy as jnp
import numpy as np
from jax import lax
from jax.experimental import pallas as pl
from jax.experimental.pallas import tpu as pltpu

_LANES = 128
_SUBLANES = 8


def _round_down(x, m):
    return (x // m) * m


def _round_up(x, m):
    return -(-x // m) * m


def _make_partial_kernel(br, chunk, n_blocks, valid_rows):
    """Per-block partial sums of TP / sum(x) / sum(t), statically specialized
    on (block_rows, chunk, grid size, valid row count)."""
    n_chunks = br // chunk
    last_rows = valid_rows - (n_blocks - 1) * br        # valid rows in last block, in (0, br]
    last_full_chunks = last_rows // chunk                # fully-valid chunks in the last block
    last_rem = last_rows - last_full_chunks * chunk      # ragged valid rows in the last block

    def kernel(x_ref, t_ref, out_ref):
        def chunk_sums(r, row_limit=None):
            # Stream one (chunk, 128) slab, cast to f32, optionally mask ragged rows.
            xs = x_ref[pl.ds(r, chunk), :].astype(jnp.float32)
            ts = t_ref[pl.ds(r, chunk), :].astype(jnp.float32)
            if row_limit is not None:
                rid = lax.broadcasted_iota(jnp.int32, (chunk, _LANES), 0)
                m = rid < row_limit
                # select (not multiply): out-of-bounds rows may hold arbitrary
                # bits (including NaN/Inf); where() replaces them with exact 0.
                xs = jnp.where(m, xs, 0.0)
                ts = jnp.where(m, ts, 0.0)
            # Fold along the native (8,128) tile decomposition: pure vreg adds.
            xs3 = xs.reshape(chunk // _SUBLANES, _SUBLANES, _LANES)
            ts3 = ts.reshape(chunk // _SUBLANES, _SUBLANES, _LANES)
            return (jnp.sum(xs3 * ts3, axis=0),   # TP contributions
                    jnp.sum(xs3, axis=0),          # sum(x) contributions
                    jnp.sum(ts3, axis=0))          # sum(t) contributions

        def body(c, carry):
            a_tp, a_x, a_t = carry
            r = pl.multiple_of(c * chunk, chunk)
            tp, sx, st = chunk_sums(r)
            return a_tp + tp, a_x + sx, a_t + st

        i = pl.program_id(0)
        # Number of fully-valid chunks in *this* block.  Static unless the
        # last block differs from the others.
        if n_blocks == 1:
            full_chunks = last_full_chunks
        elif last_full_chunks == n_chunks:
            full_chunks = n_chunks
        else:
            full_chunks = jnp.where(i == n_blocks - 1, last_full_chunks, n_chunks)

        zero = jnp.zeros((_SUBLANES, _LANES), jnp.float32)
        a_tp, a_x, a_t = lax.fori_loop(0, full_chunks, body, (zero, zero, zero))

        if last_rem > 0:
            # Ragged row-tail of the last block (masked in-kernel, so no extra
            # HBM padding pass is ever needed for the input arrays).
            start = last_full_chunks * chunk               # static, <= br - chunk
            if n_blocks == 1:
                limit = last_rem
            else:
                limit = jnp.where(i == n_blocks - 1, last_rem, 0)
            tp, sx, st = chunk_sums(start, row_limit=limit)
            a_tp, a_x, a_t = a_tp + tp, a_x + sx, a_t + st

        out_ref[0, 0, :, :] = a_tp
        out_ref[0, 1, :, :] = a_x
        out_ref[0, 2, :, :] = a_t

    return kernel


def _focal_tversky_partial_sums(x_flat, t_flat, *, block_rows=4096):
    """Single streaming pass over the flattened inputs.

    Returns float32 scalars (TP, Sx, St) with TP = sum(x*t), Sx = sum(x),
    St = sum(t)."""
    total = x_flat.shape[0]

    # Zero padding is mathematically exact (contributes 0 to all three sums),
    # but it costs a full HBM copy, so it is only used for the rare cases
    # where the element count is not a multiple of 128 or the input is tiny.
    # All realistic segmentation shapes take the copy-free path below
    # (reshape to (rows, 128) is a bitcast; the ragged last block is masked
    # inside the kernel).
    if total % _LANES != 0:
        pad = _LANES - total % _LANES
        x_flat = jnp.pad(x_flat, (0, pad))
        t_flat = jnp.pad(t_flat, (0, pad))
        total += pad
    rows = total // _LANES
    if rows < _SUBLANES:
        pad = (_SUBLANES - rows) * _LANES
        x_flat = jnp.pad(x_flat, (0, pad))
        t_flat = jnp.pad(t_flat, (0, pad))
        rows = _SUBLANES

    block_rows = max(_SUBLANES, int(block_rows))
    br = max(_SUBLANES, min(_round_down(block_rows, _SUBLANES),
                            _round_down(rows, _SUBLANES)))
    chunk = next(c for c in (64, 32, 16, 8) if br % c == 0)
    n_blocks = _round_up(rows, br) // br

    x2 = x_flat.reshape(rows, _LANES)
    t2 = t_flat.reshape(rows, _LANES)

    kernel = _make_partial_kernel(br, chunk, n_blocks, rows)

    in_spec = pl.BlockSpec((br, _LANES), lambda i: (i, 0))
    out_spec = pl.BlockSpec((1, 3, _SUBLANES, _LANES), lambda i: (i, 0, 0, 0))

    partials = pl.pallas_call(
        kernel,
        out_shape=jax.ShapeDtypeStruct((n_blocks, 3, _SUBLANES, _LANES),
                                       jnp.float32),
        grid=(n_blocks,),
        in_specs=[in_spec, in_spec],
        out_specs=out_spec,
        compiler_params=pltpu.CompilerParams(
            dimension_semantics=("parallel",)),
    )(x2, t2)

    # Tiny final reduction over the packed per-block partial slabs (XLA).
    sums = jnp.sum(partials, axis=(0, 2, 3))   # -> (3,)
    return sums[0], sums[1], sums[2]


def elbo_focal_tversky_forward(inputs, targets, kl, beta=1e-7, *,
                               alpha=0.5, tversky_beta=0.5,
                               smooth=1.0, gamma=1.0, block_rows=4096):
    """Pallas implementation of ELBO_FocalTverskyLoss.forward."""
    x = inputs.reshape(-1)
    t = targets.reshape(-1)
    TP, Sx, St = _focal_tversky_partial_sums(x, t, block_rows=block_rows)
    FP = Sx - TP      # == sum((1 - t) * x)
    FN = St - TP      # == sum(t * (1 - x))
    tversky = (TP + smooth) / (TP + alpha * FP + tversky_beta * FN + smooth)
    focal = (1.0 - tversky) ** gamma
    return focal + jnp.float32(beta) * jnp.asarray(kl, jnp.float32)


def elbo_focal_tversky_reference(inputs, targets, kl, beta=1e-7, *,
                                 alpha=0.5, tversky_beta=0.5,
                                 smooth=1.0, gamma=1.0):
    """Pure-JAX reference matching the PyTorch semantics."""
    x = inputs.reshape(-1).astype(jnp.float32)
    t = targets.reshape(-1).astype(jnp.float32)
    TP = jnp.sum(x * t)
    FP = jnp.sum((1.0 - t) * x)
    FN = jnp.sum(t * (1.0 - x))
    tversky = (TP + smooth) / (TP + alpha * FP + tversky_beta * FN + smooth)
    focal = (1.0 - tversky) ** gamma
    return focal + beta * kl


if __name__ == "__main__":
    key = jax.random.PRNGKey(0)
    k1, k2, k3 = jax.random.split(key, 3)

    # Case 1: typical aligned segmentation-shaped input.
    N, C, H, W = 2, 4, 16, 16
    inputs = jax.nn.sigmoid(jax.random.normal(k1, (N, C, H, W), dtype=jnp.float32))
    targets = (jax.random.uniform(k2, (N, C, H, W)) > 0.5).astype(jnp.float32)
    kl = jax.random.uniform(k3, (), dtype=jnp.float32) * 10.0
    beta_kl = 0.01

    out = elbo_focal_tversky_forward(inputs, targets, kl, beta_kl)
    out = jax.block_until_ready(out)
    ref = elbo_focal_tversky_reference(inputs, targets, kl, beta_kl)
    np.testing.assert_allclose(np.asarray(out), np.asarray(ref),
                               rtol=1e-5, atol=1e-5)

    # Case 2: ragged row count (exercises the pad-free masked last block and
    # the dynamic full-chunk count).
    k4, k5 = jax.random.split(k3)
    inputs2 = jax.nn.sigmoid(jax.random.normal(k4, (2, 3, 24, 16), dtype=jnp.float32))
    targets2 = (jax.random.uniform(k5, (2, 3, 24, 16)) > 0.5).astype(jnp.float32)

    out2 = elbo_focal_tversky_forward(inputs2, targets2, kl, beta_kl)
    out2 = jax.block_until_ready(out2)
    ref2 = elbo_focal_tversky_reference(inputs2, targets2, kl, beta_kl)
    np.testing.assert_allclose(np.asarray(out2), np.asarray(ref2),
                               rtol=1e-5, atol=1e-5)

    print("KERNEL_OK")
</pallas_src>

<mosaic_0001>
module attributes {stable_mosaic.version = 11 : i64} {
  func.func @kernel(%arg0: i32, %arg1: memref<16x128xf32, #tpu.memory_space<vmem>>, %arg2: memref<16x128xf32, #tpu.memory_space<vmem>>, %arg3: memref<1x3x8x128xf32, #tpu.memory_space<vmem>>) attributes {dimension_semantics = [#tpu.dimension_semantics<parallel>], iteration_bounds = array<i64: 1>, scalar_prefetch = 0 : i64, scratch_operands = 0 : i64, tpu.core_type = #tpu.core_type<tc>, window_params = [{transform_indices = @transform_0, window_bounds = array<i64: 16, 128>}, {transform_indices = @transform_1, window_bounds = array<i64: 16, 128>}, {transform_indices = @transform_2, window_bounds = array<i64: 1, 3, 8, 128>}]} {
    %cst = arith.constant 0.000000e+00 : f32
    %0 = vector.broadcast %cst : f32 to vector<8x128xf32>
    %c0_i32 = arith.constant 0 : i32
    %c16_i32 = arith.constant 16 : i32
    %1 = arith.muli %c0_i32, %c16_i32 : i32
    %2 = tpu.assume_multiple %1, 16 : i32
    %3 = arith.index_cast %2 : i32 to index
    %c0 = arith.constant 0 : index
    %4 = vector.load %arg1[%3, %c0] : memref<16x128xf32, #tpu.memory_space<vmem>>, vector<16x128xf32>
    %5 = arith.index_cast %2 : i32 to index
    %c0_0 = arith.constant 0 : index
    %6 = vector.load %arg2[%5, %c0_0] : memref<16x128xf32, #tpu.memory_space<vmem>>, vector<16x128xf32>
    %7 = vector.shape_cast %4 : vector<16x128xf32> to vector<2x8x128xf32>
    %8 = vector.shape_cast %6 : vector<16x128xf32> to vector<2x8x128xf32>
    %9 = arith.mulf %7, %8 : vector<2x8x128xf32>
    %cst_1 = arith.constant dense<0.000000e+00> : vector<8x128xf32>
    %10 = vector.multi_reduction <add>, %9, %cst_1 [0] : vector<2x8x128xf32> to vector<8x128xf32>
    %cst_2 = arith.constant dense<0.000000e+00> : vector<8x128xf32>
    %11 = vector.multi_reduction <add>, %7, %cst_2 [0] : vector<2x8x128xf32> to vector<8x128xf32>
    %cst_3 = arith.constant dense<0.000000e+00> : vector<8x128xf32>
    %12 = vector.multi_reduction <add>, %8, %cst_3 [0] : vector<2x8x128xf32> to vector<8x128xf32>
    %13 = arith.addf %0, %10 : vector<8x128xf32>
    %14 = arith.addf %0, %11 : vector<8x128xf32>
    %15 = arith.addf %0, %12 : vector<8x128xf32>
    %c1_i32 = arith.constant 1 : i32
    %c0_4 = arith.constant 0 : index
    %c0_5 = arith.constant 0 : index
    %c0_6 = arith.constant 0 : index
    %c0_7 = arith.constant 0 : index
    %16 = vector.load %arg3[%c0_4, %c0_5, %c0_6, %c0_7] : memref<1x3x8x128xf32, #tpu.memory_space<vmem>>, vector<1x1x8x128xf32>
    %17 = vector.shape_cast %16 : vector<1x1x8x128xf32> to vector<8x128xf32>
    %18 = vector.shape_cast %13 : vector<8x128xf32> to vector<1x1x8x128xf32>
    tpu.vector_store %arg3[%c0_4, %c0_5, %c0_6, %c0_7], %18 {strides = array<i32>} : memref<1x3x8x128xf32, #tpu.memory_space<vmem>>, vector<1x1x8x128xf32>,
    %c0_8 = arith.constant 0 : index
    %c1 = arith.constant 1 : index
    %c0_9 = arith.constant 0 : index
    %c0_10 = arith.constant 0 : index
    %19 = vector.load %arg3[%c0_8, %c1, %c0_9, %c0_10] : memref<1x3x8x128xf32, #tpu.memory_space<vmem>>, vector<1x1x8x128xf32>
    %20 = vector.shape_cast %19 : vector<1x1x8x128xf32> to vector<8x128xf32>
    %21 = vector.shape_cast %14 : vector<8x128xf32> to vector<1x1x8x128xf32>
    tpu.vector_store %arg3[%c0_8, %c1, %c0_9, %c0_10], %21 {strides = array<i32>} : memref<1x3x8x128xf32, #tpu.memory_space<vmem>>, vector<1x1x8x128xf32>,
    %c0_11 = arith.constant 0 : index
    %c2 = arith.constant 2 : index
    %c0_12 = arith.constant 0 : index
    %c0_13 = arith.constant 0 : index
    %22 = vector.load %arg3[%c0_11, %c2, %c0_12, %c0_13] : memref<1x3x8x128xf32, #tpu.memory_space<vmem>>, vector<1x1x8x128xf32>
    %23 = vector.shape_cast %22 : vector<1x1x8x128xf32> to vector<8x128xf32>
    %24 = vector.shape_cast %15 : vector<8x128xf32> to vector<1x1x8x128xf32>
    tpu.vector_store %arg3[%c0_11, %c2, %c0_12, %c0_13], %24 {strides = array<i32>} : memref<1x3x8x128xf32, #tpu.memory_space<vmem>>, vector<1x1x8x128xf32>,
    return
  }
  func.func @transform_0(%arg0: i32) -> (i32, i32) {
    %c0_i32 = arith.constant 0 : i32
    %c0_i32_0 = arith.constant 0 : i32
    return %arg0, %c0_i32 : i32, i32
  }
  func.func @transform_1(%arg0: i32) -> (i32, i32) {
    %c0_i32 = arith.constant 0 : i32
    %c0_i32_0 = arith.constant 0 : i32
    return %arg0, %c0_i32 : i32, i32
  }
  func.func @transform_2(%arg0: i32) -> (i32, i32, i32, i32) {
    %c0_i32 = arith.constant 0 : i32
    %c0_i32_0 = arith.constant 0 : i32
    %c0_i32_1 = arith.constant 0 : i32
    %c0_i32_2 = arith.constant 0 : i32
    return %arg0, %c0_i32, %c0_i32_0, %c0_i32_1 : i32, i32, i32, i32
  }
}

</mosaic_0001>

<bundles_post_ra>
// kernel: tpu_custom_call.1
= control target key start
LH: loop header
LB: loop body
LE: loop exit
PB: predicated region body
PF: predicated region fallthrough
CT: control target
= control target key end

     0   :  { %7 = vsyncpa [#allocation3], 0  ;;  %s217_s0 = inlined_call_operand.hbm [shape: f32[16,128], index: 0, kind: input, shape index: {}]   ;;  %s218_s1 = inlined_call_operand.hbm [shape: f32[16,128], index: 1, kind: input, shape index: {}]   ;;  %s219_s2 = inlined_call_operand.hbm [shape: f32[1,3,8,128], index: 2, kind: output, shape index: {}]  }
   0x1   :  { %8 = vsyncpa [#allocation6], 0 }
   0x2   :  { %9 = vsyncpa [#allocation4], 0  ;;  %s152_s9 = smov [#allocation2]   ;;  %s80_s13 = scalar_lea.hbm %s217_s0, 256 }
   0x3   :  { %s15_s10 = sshll.u32 %s152_s9, 4  ;;  %p81_p0 = scmp.ne.s32.totalorder %s217_s0, %s80_s13  ;;  %s16_s10 = int_to_ptr.vmem [resolvable:$true] %s15_s10 }
   0x4   :  { %p84_p1 = scmp.lt.u32.totalorder %s80_s13, %s217_s0 }
   0x6   :  { %p86_p2 = pnand %p84_p1, %p81_p0 }
   0x8   :  { %89 = shalt.err (!%p86_p2)
}
   0x9   :  { %s90_s18 = scalar_lea.vmem %s16_s10, 256  ;;  %p95_p4 = scmp.lt.s32.totalorder %s16_s10, %s16_s10 }
   0xa   :  { %p91_p3 = scmp.ne.s32.totalorder %s16_s10, %s90_s18  ;;  %p96_p5 = scmp.lt.s32.totalorder %s90_s18, %s90_s18 }
   0xc   :  { %p97_p6 = por %p96_p5, %p95_p4 }
   0xe   :  { %p98_p7 = pnand %p97_p6, %p91_p3 }
  0x10   :  { %101 = shalt.err (!%p98_p7)
}
  0x11   :  { %s153_s19 = smov 128   ;;  %s154_s20 = smov 8  }
  0x12   :  { %21 = dma.hbm_to_vmem [thread:$0]  %s217_s0, 256, %s16_s10, [#allocation3], %s153_s19, %s153_s19, %s154_s20  }
  0x13   :  { %s155_s23 = smov [#allocation5]   ;;  %s102_s27 = scalar_lea.hbm %s218_s1, 256 }
  0x14   :  { %s27_s24 = sshll.u32 %s155_s23, 4  ;;  %p103_p8 = scmp.ne.s32.totalorder %s218_s1, %s102_s27  ;;  %s28_s24 = int_to_ptr.vmem [resolvable:$true] %s27_s24 }
  0x15   :  { %p106_p9 = scmp.lt.u32.totalorder %s102_s27, %s218_s1 }
  0x17   :  { %p108_p10 = pnand %p106_p9, %p103_p8 }
  0x19   :  { %111 = shalt.err (!%p108_p10)
}
  0x1a   :  { %s112_s4 = scalar_lea.vmem %s28_s24, 256  ;;  %p117_p12 = scmp.lt.s32.totalorder %s28_s24, %s28_s24 }
  0x1b   :  { %p113_p11 = scmp.ne.s32.totalorder %s28_s24, %s112_s4  ;;  %p118_p13 = scmp.lt.s32.totalorder %s112_s4, %s112_s4 }
  0x1d   :  { %p119_p0 = por %p118_p13, %p117_p12 }
  0x1f   :  { %p120_p1 = pnand %p119_p0, %p113_p11 }
  0x21   :  { %123 = shalt.err (!%p120_p1)
}
  0x22   :  { %33 = dma.hbm_to_vmem [thread:$0]  %s218_s1, 256, %s28_s24, [#allocation6], %s153_s19, %s153_s19, %s154_s20  }
  0x23   :  { %146 = dma.done.wait [#allocation3], 256  }
  0x24   :  { %147 = vsyncadd [#allocation3], 4294967040 }
  0x25   :  { %148 = dma.done.wait [#allocation6], 256  }
  0x26   :  { %149 = vsyncadd [#allocation6], 4294967040  ;;  %v40_v0 = vld [vmem:[#allocation2] sm:$0xff]  ;;  %v41_v1 = vld [vmem:[#allocation2 + $0x8] sm:$0xff]  ;;  %s156_s6 = smov [#allocation7]  }
  0x27   :  { %v42_v2 = vld [vmem:[#allocation5] sm:$0xff]  ;;  %v43_v3 = vld [vmem:[#allocation5 + $0x8] sm:$0xff]  ;;  %v47_v5 = vadd.f32 %v41_v1, %v40_v0  ;;  %s62_s7 = sshll.u32 %s156_s6, 4  ;;  %s63_s7 = int_to_ptr.vmem [resolvable:$true] %s62_s7 }
  0x28   :  { %v44_v4 = vmul.f32 %v42_v2, %v40_v0  ;;  %v45_v6 = vmul.f32 %v43_v3, %v41_v1  ;;  %v48_v7 = vadd.f32 %v43_v3, %v42_v2  ;;  %s124_s1 = scalar_lea.vmem %s63_s7, 384  ;;  %p129_p3 = scmp.lt.s32.totalorder %s63_s7, %s63_s7 }
  0x29   :  { %54 = vst [vmem:[#allocation7 + $0x8] sm:$0xff] %v47_v5  ;;  %p125_p2 = scmp.ne.s32.totalorder %s63_s7, %s124_s1  ;;  %p130_p4 = scmp.lt.s32.totalorder %s124_s1, %s124_s1 }
  0x2a   :  { %v46_v8 = vadd.f32 %v45_v6, %v44_v4  ;;  %56 = vst [vmem:[#allocation7 + $0x10] sm:$0xff] %v48_v7 }
  0x2b   :  { %p131_p5 = por %p130_p4, %p129_p3 }
  0x2c   :  { %52 = vst [vmem:[#allocation7] sm:$0xff] %v46_v8 }
  0x2d   :  { %p132_p6 = pnand %p131_p5, %p125_p2 }
  0x2f   :  { %135 = shalt.err (!%p132_p6)
}
  0x30   :  { %s136_s10 = scalar_lea.hbm %s219_s2, 384 }
  0x31   :  { %p137_p7 = scmp.ne.s32.totalorder %s219_s2, %s136_s10  ;;  %p140_p8 = scmp.lt.u32.totalorder %s136_s10, %s219_s2 }
  0x33   :  { %p142_p9 = pnand %p140_p8, %p137_p7 }
  0x35   :  { %145 = shalt.err (!%p142_p9)
}
  0x36   :  { %68 = dma.vmem_to_hbm [thread:$0]  %s63_s7, 384, %s219_s2, [#allocation4], %s153_s19, %s153_s19, %s154_s20  }
  0x37   :  { %150 = dma.done.wait [#allocation4], 384  }
  0x38   :  { %151 = vsyncadd [#allocation4], 4294966912 }
  0x39   :  { %72 = vsyncpa [#allocation3], 1 }
  0x3a   :  { %73 = vsyncpa [#allocation6], 1 }
  0x3b   :  { %74 = vsyncpa [#allocation4], 1 }

</bundles_post_ra>
